<compile_context>
chip_gen: v6e
topology: v6e:2x2x1
jax: 0.10.0
libtpu: 0.0.40
codegen_flags: <defaults>
</compile_context>

<pallas_src>
import math

import jax
import jax.numpy as jnp
import numpy as np
from jax.experimental import pallas as pl
from jax.experimental.pallas import tpu as pltpu


# ----------------------------------------------------------------------------
# Glue: deterministic construction of the `sh` buffer (real spherical
# harmonics, m ordered -l..l, standard orthonormal normalization).
# TODO(synk): exact e3nn o3.spherical_harmonics normalization / argument-order
# convention may differ slightly; this is the standard real-SH basis.
# ----------------------------------------------------------------------------
def _assoc_legendre(l, m, x):
    pmm = jnp.ones_like(x)
    if m > 0:
        somx2 = jnp.sqrt(jnp.maximum(0.0, (1.0 - x) * (1.0 + x)))
        fact = 1.0
        for _ in range(m):
            pmm = pmm * (-fact) * somx2
            fact += 2.0
    if l == m:
        return pmm
    pmmp1 = x * (2 * m + 1) * pmm
    if l == m + 1:
        return pmmp1
    pll = pmmp1
    for ll in range(m + 2, l + 1):
        pll = ((2 * ll - 1) * x * pmmp1 - (ll + m - 1) * pmm) / (ll - m)
        pmm, pmmp1 = pmmp1, pll
    return pll


def _sh_norm(l, m):
    return math.sqrt(
        (2 * l + 1) / (4.0 * math.pi) * math.factorial(l - m) / math.factorial(l + m)
    )


def _sh_lm(l, m, alpha, beta):
    x = jnp.cos(beta)
    if m == 0:
        return _sh_norm(l, 0) * _assoc_legendre(l, 0, x)
    if m > 0:
        return math.sqrt(2.0) * _sh_norm(l, m) * jnp.cos(m * alpha) * _assoc_legendre(l, m, x)
    return math.sqrt(2.0) * _sh_norm(l, -m) * jnp.sin(-m * alpha) * _assoc_legendre(l, -m, x)


def spherical_harmonics(l, alpha, beta):
    """Returns shape (2l+1, *alpha.shape)."""
    return jnp.stack([_sh_lm(l, m, alpha, beta) for m in range(-l, l + 1)], axis=0)


def build_sh_buffer(alpha, beta, lmax):
    return jnp.concatenate(
        [spherical_harmonics(l, alpha, beta) for l in range(lmax + 1)], axis=0
    ).astype(jnp.float32)


# ----------------------------------------------------------------------------
# Pallas kernel: out[0, :] = sum_i coeff[i, 0] * sh[i, :]   (einsum 'i,ip->p')
# ----------------------------------------------------------------------------
def _project_kernel(coeff_ref, sh_ref, out_ref):
    # coeff_ref: (N, 1) f32, constant across grid steps (resident; Pallas skips
    #            the re-DMA because the block index never changes).
    # sh_ref:    (N, TILE_P) f32 lane tile.
    # out_ref:   (1, TILE_P) f32, lane-dense.
    # Lane-broadcast coeff column, VPU multiply, XLU sublane-reduce over the N
    # rows.  All of this hides under the HBM stream of sh (memory bound).
    out_ref[...] = jnp.sum(sh_ref[...] * coeff_ref[...], axis=0, keepdims=True)


def _choose_tile_p(n, p):
    """Lane-tile width: big (HBM-bound op), VMEM-safe, and >=2 grid steps."""
    lane = 128
    p_pad = pl.cdiv(p, lane) * lane
    # ~4 MiB per sh tile (x2 for double buffering) counting the N sh rows plus
    # the 1 output row; fits every generation's default scoped-VMEM limit
    # (v5e 16 MiB, v6e/v7x 32 MiB) without raising vmem_limit_bytes.
    budget_bytes = 4 * 1024 * 1024
    max_tile = max(lane, (budget_bytes // ((n + 1) * 4)) // lane * lane)
    tile = min(max_tile, p_pad)
    # Prefer >=2 grid steps so ("parallel",) shards tiles across v7x's 2 TCs
    # and the input/output DMAs pipeline against compute.
    if p_pad > lane and pl.cdiv(p, tile) < 2:
        tile = max(lane, (p_pad // 2) // lane * lane)
    return tile


def spherical_harmonics_project(coeff, sh, *, tile_p=None):
    """Pallas implementation of einsum('i,i...->...', coeff, sh)."""
    coeff = coeff.astype(jnp.float32)
    sh = sh.astype(jnp.float32)
    n = coeff.shape[0]
    assert sh.shape[0] == n, "coeff length must match sh leading dim"
    trailing = sh.shape[1:]
    p = int(np.prod(trailing)) if trailing else 1

    sh2 = sh.reshape(n, p)        # contiguous view; no padding pass over HBM
    coeff2 = coeff.reshape(n, 1)

    if tile_p is None:
        tile_p = _choose_tile_p(n, p)

    grid = (pl.cdiv(p, tile_p),)
    out = pl.pallas_call(
        _project_kernel,
        out_shape=jax.ShapeDtypeStruct((1, p), jnp.float32),
        grid=grid,
        in_specs=[
            pl.BlockSpec((n, 1), lambda j: (0, 0)),        # coeff: resident column
            pl.BlockSpec((n, tile_p), lambda j: (0, j)),   # sh: lane tile j
        ],
        out_specs=pl.BlockSpec((1, tile_p), lambda j: (0, j)),
        compiler_params=pltpu.CompilerParams(
            dimension_semantics=("parallel",),
        ),
    )(coeff2, sh2)

    return out[0].reshape(trailing)


# ----------------------------------------------------------------------------
# Demo / self-check
# ----------------------------------------------------------------------------
if __name__ == "__main__":
    lmax = 3
    n_coeff = (lmax + 1) ** 2          # 16

    key = jax.random.PRNGKey(0)
    k_a, k_b, k_c = jax.random.split(key, 3)
    coeff = jax.random.normal(k_c, (n_coeff,), jnp.float32)

    # Case 1: 1-D angle batch, P multiple of 128.
    n_points = 256
    alpha = jax.random.uniform(k_a, (n_points,), jnp.float32, 0.0, 2.0 * math.pi)
    beta = jax.random.uniform(k_b, (n_points,), jnp.float32, 0.0, math.pi)
    sh = build_sh_buffer(alpha, beta, lmax)                 # (16, 256)

    out = jax.block_until_ready(spherical_harmonics_project(coeff, sh))
    ref = jnp.einsum("i,i...->...", coeff, sh)
    np.testing.assert_allclose(np.asarray(out), np.asarray(ref), rtol=1e-5, atol=1e-5)

    # Case 2: multi-dim trailing shape with ragged P (exercises masked tail).
    alpha2 = jax.random.uniform(k_a, (3, 50), jnp.float32, 0.0, 2.0 * math.pi)
    beta2 = jax.random.uniform(k_b, (3, 50), jnp.float32, 0.0, math.pi)
    sh2 = build_sh_buffer(alpha2, beta2, lmax)              # (16, 3, 50)

    out2 = jax.block_until_ready(spherical_harmonics_project(coeff, sh2))
    ref2 = jnp.einsum("i,i...->...", coeff, sh2)
    np.testing.assert_allclose(np.asarray(out2), np.asarray(ref2), rtol=1e-5, atol=1e-5)

    # Case 3: larger 1-D batch exercising multiple pipelined grid steps with
    # a forced smaller tile (still lane-aligned) and a ragged final block.
    n_points3 = 5000
    alpha3 = jax.random.uniform(k_a, (n_points3,), jnp.float32, 0.0, 2.0 * math.pi)
    beta3 = jax.random.uniform(k_b, (n_points3,), jnp.float32, 0.0, math.pi)
    sh3 = build_sh_buffer(alpha3, beta3, lmax)              # (16, 5000)

    out3 = jax.block_until_ready(
        spherical_harmonics_project(coeff, sh3, tile_p=1024)
    )
    ref3 = jnp.einsum("i,i...->...", coeff, sh3)
    np.testing.assert_allclose(np.asarray(out3), np.asarray(ref3), rtol=1e-5, atol=1e-5)

    print("KERNEL_OK")
</pallas_src>

<mosaic_0001>
module attributes {stable_mosaic.version = 11 : i64} {
  func.func @_project_kernel(%arg0: i32, %arg1: memref<16x1xf32, #tpu.memory_space<vmem>>, %arg2: memref<16x128xf32, #tpu.memory_space<vmem>>, %arg3: memref<1x128xf32, #tpu.memory_space<vmem>>) attributes {dimension_semantics = [#tpu.dimension_semantics<parallel>], iteration_bounds = array<i64: 2>, scalar_prefetch = 0 : i64, scratch_operands = 0 : i64, tpu.core_type = #tpu.core_type<tc>, window_params = [{pipeline_mode = #tpu.pipeline_mode<synchronous>, transform_indices = @transform_0, window_bounds = array<i64: 16, 1>}, {transform_indices = @transform_1, window_bounds = array<i64: 16, 128>}, {transform_indices = @transform_2, window_bounds = array<i64: 1, 128>}]} {
    %c0 = arith.constant 0 : index
    %c0_0 = arith.constant 0 : index
    %0 = vector.load %arg2[%c0, %c0_0] : memref<16x128xf32, #tpu.memory_space<vmem>>, vector<16x128xf32>
    %c0_1 = arith.constant 0 : index
    %c0_2 = arith.constant 0 : index
    %1 = vector.load %arg1[%c0_1, %c0_2] : memref<16x1xf32, #tpu.memory_space<vmem>>, vector<16x1xf32>
    %2 = vector.broadcast %1 : vector<16x1xf32> to vector<16x128xf32>
    %3 = arith.mulf %0, %2 : vector<16x128xf32>
    %cst = arith.constant dense<0.000000e+00> : vector<128xf32>
    %4 = vector.multi_reduction <add>, %3, %cst [0] : vector<16x128xf32> to vector<128xf32>
    %5 = vector.shape_cast %4 : vector<128xf32> to vector<1x128xf32>
    %c0_3 = arith.constant 0 : index
    %c0_4 = arith.constant 0 : index
    %6 = vector.load %arg3[%c0_3, %c0_4] : memref<1x128xf32, #tpu.memory_space<vmem>>, vector<1x128xf32>
    tpu.vector_store %arg3[%c0_3, %c0_4], %5 {strides = array<i32>} : memref<1x128xf32, #tpu.memory_space<vmem>>, vector<1x128xf32>,
    return
  }
  func.func @transform_0(%arg0: i32) -> (i32, i32) {
    %c0_i32 = arith.constant 0 : i32
    %c0_i32_0 = arith.constant 0 : i32
    %c0_i32_1 = arith.constant 0 : i32
    return %c0_i32, %c0_i32_0 : i32, i32
  }
  func.func @transform_1(%arg0: i32) -> (i32, i32) {
    %c0_i32 = arith.constant 0 : i32
    %c0_i32_0 = arith.constant 0 : i32
    return %c0_i32, %arg0 : i32, i32
  }
  func.func @transform_2(%arg0: i32) -> (i32, i32) {
    %c0_i32 = arith.constant 0 : i32
    %c0_i32_0 = arith.constant 0 : i32
    return %c0_i32, %arg0 : i32, i32
  }
}

</mosaic_0001>

<bundles_post_ra>
// kernel: tpu_custom_call.1
= control target key start
LH: loop header
LB: loop body
LE: loop exit
PB: predicated region body
PF: predicated region fallthrough
CT: control target
= control target key end

     0   :  { %7 = vsyncpa [#allocation3], 0  ;;  %s588_s0 = inlined_call_operand.vmem [shape: f32[16,1], index: 0, kind: input, shape index: {}]   ;;  %s589_s1 = inlined_call_operand.hbm [shape: f32[16,256], index: 1, kind: input, shape index: {}]   ;;  %s590_s2 = inlined_call_operand.hbm [shape: f32[1,256], index: 2, kind: output, shape index: {}]  }
   0x1   :  { %9 = vsyncpa [#allocation3 + $0x1], 0 }
   0x2   :  { %10 = vsyncpa [#allocation4], 0 }
   0x3   :  { %12 = vsyncpa [#allocation4 + $0x1], 0  ;;  %s439_s9 = smov 0   ;;  %s441_s10 = smov 0  }
   0x4   :  { %s443_s11 = smov 0   ;;  %s445_s12 = smov 0  }
   0x5 LB: > { %s460_s13 = sadd.s32 4294967295, %s416_s12   ;;  %s263_s14 = sadd.s32 4294967294, %s416_s12   ;;  %s416_s12 = sphi %s445_s12, %s606_s12   ;;  %s412_s11 = sphi %s443_s11, %s605_s11   ;;  %s408_s10 = sphi %s441_s10, %s604_s10   ;;  %s404_s9 = sphi %s439_s9, %s603_s9  }
   0x6   : > { %s464_s15 = sadd.s32 1, %s416_s12   ;;  %s46_s16 = sadd.s32 1, %s412_s11 }
   0x7   : > { %s43_s17 = ssub.s32 %s416_s12, %s464_s15  ;;  %p53_p0 = scmp.ne.s32.totalorder %s412_s11, %s408_s10 }
   0x8   : > { %p44_p1 = scmp.eq.s32.totalorder %s43_s17, 0  ;;  %p54_p2 = scmp.eq.s32.totalorder %s416_s12, 0 }
   0x9   : > { %p59_p3 = scmp.ne.s32.totalorder %s408_s10, %s404_s9  ;;  %p60_p4 = scmp.eq.s32.totalorder %s460_s13, 0 }
   0xa   : > { %s476_s18 = scalar_select %p44_p1, %s412_s11, %s46_s16  }
   0xb   : > { %p478_p5 = por %p54_p2, %p53_p0  ;;  %p482_p6 = por %p60_p4, %p59_p3 }
   0xc   : > { %p83_p7 = scmp.eq.s32.totalorder %s460_s13, 1  ;;  %p89_p8 = scmp.eq.s32.totalorder %s263_s14, 1 }
   0xd   : > { %s594_s20 = scalar_select %p482_p6, 1, 0 }
   0xe   : > { %p285_p10 = scmp.lt.s32.totalorder %s416_s12, 2  ;;  %p489_p11 = por %p83_p7, %p53_p0 }
   0xf   : > { %p493_p12 = por %p89_p8, %p59_p3  ;;  %s112_s23 = sand.u32 1, %s412_s11  }
  0x10   : > { %s595_s21 = scalar_select %p489_p11, 1, 0 }
  0x11   : > { %s596_s22 = scalar_select %p493_p12, 1, 0 }
  0x12   : > { %s267_s24 = sshll.u32 %s416_s12, 7  ;;  %s266_s25 = sshll.u32 %s112_s23, 4 }
  0x13   : > { %s502_s28 = scalar_lea.hbm %s589_s1, %s267_s24  ;;  %s116_s29 = scalar_lea.vmem [#allocation2], %s266_s25 }
  0x14   : > { %s122_s30 = sshll.u32 %s116_s29, 4  ;;  %p506_p13 = pnand %p285_p10, %p478_p5  ;;  %s510_s30 = int_to_ptr.vmem [resolvable:$true] %s122_s30 }
  0x15   : > { %s513_s4 = scalar_lea.sflag [#allocation3], %s112_s23  ;;  %s324_s5 = scalar_lea.hbm %s502_s28, 256 }
  0x16   : > { %p325_p1 = scmp.ne.s32.totalorder %s502_s28, %s324_s5  ;;  %p326_p2 = pneg %p506_p13 }
  0x17   : > { %s329_s8 = scalar_lea.hbm %s589_s1, 512  ;;  %p330_p5 = scmp.lt.s32.totalorder %s502_s28, %s589_s1 }
  0x18   : > { %p327_p3 = pnand %p326_p2, %p325_p1  ;;  %p331_p7 = scmp.lt.s32.totalorder %s329_s8, %s324_s5 }
  0x1a   : > { %p328_p4 = pneg %p327_p3  ;;  %p332_p8 = por %p331_p7, %p330_p5 }
  0x1c   : > { %p333_p10 = pnand %p332_p8, %p328_p4 }
  0x1e   : > { %336 = shalt.err (!%p333_p10)
}
  0x1f   : > { %s337_s17 = scalar_lea.vmem %s510_s30, 256  ;;  %s418_s19 = smov [#allocation2]  }
  0x20   : > { %p338_p9 = scmp.ne.s32.totalorder %s510_s30, %s337_s17  ;;  %s342_s23 = sshll.u32 %s418_s19, 4  ;;  %s343_s23 = int_to_ptr.vmem [resolvable:$false] %s342_s23 }
  0x21   : > { %s344_s24 = scalar_lea.vmem %s343_s23, 512  ;;  %p345_p3 = scmp.lt.s32.totalorder %s510_s30, %s343_s23 }
  0x22   : > { %p340_p0 = pnand %p338_p9, %p326_p2  ;;  %p346_p12 = scmp.lt.s32.totalorder %s344_s24, %s337_s17 }
  0x24   : > { %p341_p1 = pneg %p340_p0  ;;  %p347_p11 = por %p346_p12, %p345_p3 }
  0x26   : > { %p348_p6 = pnand %p347_p11, %p341_p1 }
  0x28   : > { %351 = shalt.err (!%p348_p6)
}
  0x29   : > { %s419_s25 = smov 256   ;;  %s420_s26 = smov 128  }
  0x2a   : > { %s421_s27 = smov 8   ;;  %p130_p9 = scmp.lt.s32.totalorder %s416_s12, 3 }
  0x2b   : > { %280 = dma.hbm_to_vmem [thread:$0]  (!%p506_p13), %s502_s28, 256, %s510_s30, %s513_s4, %s419_s25, %s420_s26, %s421_s27  }
  0x2c   : > { %p598_p0 = scmp.ge.s32.totalorder %s416_s12, 1 }
  0x2e   : > { %p131_p2 = pnand %p598_p0, %p130_p9 }
  0x2f   : > { %s538_s29 = sand.u32 (!%p131_p2), 1, %s408_s10   ;;  %p599_p6 = scmp.ne.s32.totalorder (!%p131_p2), %s594_s20, 0 }
  0x30   : > { %134 = sbr.rel (%p131_p2) target bundleno = 213 (0xd5), region = 28  ;;  %s269_s5 = sshll.u32 (!%p131_p2), %s538_s29, 4 }
  0x31   : > { %s137_s6 = scalar_lea.sflag (!%p131_p2), [#allocation3], %s538_s29  ;;  %s140_s7 = scalar_lea.vmem (!%p131_p2), [#allocation2], %s269_s5 }
  0x35   : > { %395 = dma.done.wait (%p599_p6), %s137_s6, 256  }
  0x36   : > { %397 = vsyncadd (%p599_p6), %s137_s6, 4294967040  ;;  %v422_v0 = vmov 0   ;;  %v162_v1 = vld [vmem:[%s588_s0] sm:$0xff]  ;;  %v163_v2 = vld [vmem:[%s588_s0 + $0x8] sm:$0xff]  ;;  %s270_s20 = sshll.u32 %s460_s13, 4  ;;  %s159_s8 = scalar_lea.vmem [#allocation5], %s538_s29 }
  0x37   : > { %323 = vset.pattern.permute.xlu0 %v422_v0  ;;  %v160_v4 = vld [vmem:[%s140_s7] sm:$0xff]  ;;  %v161_v5 = vld [vmem:[%s140_s7 + $0x8] sm:$0xff]  ;;  %s197_s14 = sshll.u32 %s159_s8, 4  ;;  %s195_s19 = scalar_lea.hbm %s590_s2, %s270_s20  ;;  %s198_s14 = int_to_ptr.vmem [resolvable:$true] %s197_s14 }
  0x38   : > { %166 = vperm.xlu0 %323, %v162_v1   ;;  %s185_s23 = scalar_lea.sflag [#allocation4], %s538_s29  ;;  %s352_s24 = scalar_lea.vmem %s198_s14, 16 }
  0x39   : > { %p353_p11 = scmp.ne.s32.totalorder %s198_s14, %s352_s24  ;;  %p600_p12 = scmp.ne.s32.totalorder %s595_s21, 0 }
  0x3a   : > { %s423_s25 = smov [#allocation5]  }
  0x3b   : > { %p354_p13 = pnand %p353_p11, %p600_p12  ;;  %s356_s26 = sshll.u32 %s423_s25, 4  ;;  %s357_s26 = int_to_ptr.vmem [resolvable:$false] %s356_s26 }
  0x3c   : > { %171 = vperm.xlu0 %323, %v163_v2   ;;  %s358_s13 = scalar_lea.vmem %s357_s26, 32  ;;  %p359_p5 = scmp.lt.s32.totalorder %s198_s14, %s357_s26 }
  0x3d   : > { %p355_p4 = pneg %p354_p13  ;;  %p360_p7 = scmp.lt.s32.totalorder %s358_s13, %s352_s24 }
  0x3f   : > { %p361_p8 = por %p360_p7, %p359_p5 }
  0x41   : > { %p362_p10 = pnand %p361_p8, %p355_p4 }
  0xb3   : > { %v167_v3 = vpop.permute.xlu0 %166 }
  0xb4   : > { %v174_v7 = vmul.f32 %v167_v3, %v160_v4 }
  0xb7   : > { %v172_v6 = vpop.permute.xlu0 %171 }
  0xb8   : > { %v175_v8 = vmul.f32 %v172_v6, %v161_v5 }
  0xba   : > { %v176_v9 = vadd.f32 %v175_v8, %v174_v7 }
  0xbc   : > { %v177_v10 = vrot.slane %v176_v9, 4 }
  0xbe   : > { %v178_v11 = vadd.f32 %v177_v10, %v176_v9 }
  0xc0   : > { %v179_v12 = vrot.slane %v178_v11, 2 }
  0xc2   : > { %v180_v13 = vadd.f32 %v179_v12, %v178_v11 }
  0xc4   : > { %v181_v14 = vrot.slane %v180_v13, 1 }
  0xc6   : > { %v182_v15 = vadd.f32 %v181_v14, %v180_v13 }
  0xc8   : > { %183 = vst [vmem:[%s159_s8] sm:$0x1] %v182_v15 }
  0xc9   : > { %365 = shalt.err (!%p362_p10)
}
  0xca   : > { %s366_s27 = scalar_lea.hbm %s195_s19, 16  ;;  %s370_s6 = scalar_lea.hbm %s590_s2, 32 }
  0xcb   : > { %p367_p1 = scmp.ne.s32.totalorder %s195_s19, %s366_s27  ;;  %p371_p0 = scmp.lt.s32.totalorder %s195_s19, %s590_s2 }
  0xcc   : > { %p372_p2 = scmp.lt.s32.totalorder %s370_s6, %s366_s27 }
  0xcd   : > { %p368_p3 = pnand %p367_p1, %p600_p12 }
  0xce   : > { %p373_p6 = por %p372_p2, %p371_p0 }
  0xcf   : > { %p369_p9 = pneg %p368_p3 }
  0xd1   : > { %p374_p11 = pnand %p373_p6, %p369_p9 }
  0xd3   : > { %377 = shalt.err (!%p374_p11)
}
  0xd4   : > { %275 = dma.vmem_to_hbm [thread:$0]  (%p600_p12), %s198_s14, 16, %s195_s19, %s185_s23  }
  0xd5 PF: > { %s209_s30 = sand.u32 1, %s404_s9   ;;  %p601_p13 = scmp.ne.s32.totalorder %s596_s22, 0 }
  0xd6   : > { %p602_p4 = scmp.ge.s32.totalorder %s416_s12, 2  ;;  %s210_s3 = scalar_lea.sflag [#allocation4], %s209_s30 }
  0xd8   : > { %p282_p5 = pnand %p602_p4, %p601_p13 }
  0xda   : > { %p283_p7 = pneg %p282_p5 }
  0xdc   : > { %399 = dma.done.wait (%p283_p7), %s210_s3, 16  }
  0xdd   : > { %401 = vsyncadd (%p283_p7), %s210_s3, 4294967280  ;;  %p15_p8 = scmp.ge.s32.totalorder %s464_s15, 4   ;;  %s603_s9 = smov %s408_s10 }
  0xde   : > { %s604_s10 = smov %s412_s11  ;;  %s605_s11 = smov %s476_s18 }
  0xdf   : > { %s606_s12 = smov %s464_s15  ;;  %17 = sbr.rel (!%p15_p8) target bundleno = 5 (0x5), region = 73 }
  0xe4   :  { %214 = vsyncpa [#allocation3], 1 }
  0xe5   :  { %216 = vsyncpa [#allocation3 + $0x1], 1 }
  0xe6   :  { %217 = vsyncpa [#allocation4], 1 }
  0xe7   :  { %219 = vsyncpa [#allocation4 + $0x1], 1 }

</bundles_post_ra>
